<compile_context>
chip_gen: v7x
topology: tpu7x:2x2x1
jax: 0.10.0
libtpu: 0.0.40
codegen_flags: <defaults>
</compile_context>

<pallas_src>
import functools

import jax
import jax.numpy as jnp
from jax.experimental import pallas as pl
from jax.experimental.pallas import tpu as pltpu

_LANES = 256                # 128 (pos, neg) pairs per dense row
_TILE_ROWS_MAX = 1024       # (1024, 256) f32 block = 1 MiB per input per buffer
_FAST_PATH_MAX_B = 4096     # single-invocation path for production-sized batches


# --------------------------------------------------------------------------
# One-time probe: direction of pltpu.roll's lane rotation (cached).
# --------------------------------------------------------------------------
def _roll_probe_kernel(o_ref):
    idx = jax.lax.broadcasted_iota(jnp.int32, (8, 128), 1).astype(jnp.float32)
    o_ref[...] = pltpu.roll(idx, shift=1, axis=1)


@functools.lru_cache(maxsize=None)
def _roll_next_lane_shift(lanes):
    """Static shift s with pltpu.roll(x, s, axis=-1)[..., l] == x[..., (l+1) % lanes].

    # TODO(synk): hard-code once the roll sign convention is pinned for the
    # deployed jax/Mosaic version; this probe runs a tiny kernel exactly once.
    """
    out = pl.pallas_call(
        _roll_probe_kernel,
        out_shape=jax.ShapeDtypeStruct((8, 128), jnp.float32),
    )()
    v = float(jax.device_get(out)[0, 0])
    # jnp.roll convention: roll(iota, +1)[0] == 127  ->  "next lane" = lanes - 1.
    return (lanes - 1) if v > 64.0 else 1


# --------------------------------------------------------------------------
# Small-B fast path: single invocation, whole (B, 2) arrays in VMEM.
# --------------------------------------------------------------------------
def _hybrid_loss_small_kernel(p_ref, t_ref, o_ref, *, margin, w_pair, w_point):
    p = p_ref[...].astype(jnp.float32)            # (B, 2)
    t = t_ref[...].astype(jnp.float32)

    hinge = jnp.maximum(p[:, 1:2] - p[:, 0:1] + jnp.float32(margin), 0.0)    # (B, 1)
    sq = (p - t) * (p - t)                                                   # (B, 2)

    h_sum = jnp.sum(hinge, axis=0, keepdims=True)                            # (1, 1)
    s_sum = jnp.sum(sq, axis=0, keepdims=True)                               # (1, 2)
    o_ref[...] = (jnp.float32(w_pair) * h_sum
                  + jnp.float32(w_point) * (s_sum[:, 0:1] + s_sum[:, 1:2]))  # (1, 1)


# --------------------------------------------------------------------------
# Large-B streaming path: dense (rows, 256) view, tiled reduction.
# --------------------------------------------------------------------------
def _hybrid_loss_tiled_kernel(p_ref, t_ref, o_ref, *, margin, w_pair, w_point,
                              tile_rows, lanes, tiles_per_split, total_elems,
                              needs_mask, next_shift):
    step = pl.program_id(1)

    @pl.when(step == 0)
    def _init():
        o_ref[...] = jnp.zeros_like(o_ref)

    # (tile_rows, 256) lane-dense block: flat [p0+, p0-, p1+, p1-, ...] order.
    x = p_ref[...].astype(jnp.float32)
    t = t_ref[...].astype(jnp.float32)

    lane = jax.lax.broadcasted_iota(jnp.int32, (tile_rows, lanes), 1)

    # nxt[:, l] == x[:, l + 1]: at even lanes (nxt - x) == neg - pos of that pair.
    nxt = pltpu.roll(x, shift=next_shift, axis=1)
    hinge = jnp.maximum(nxt - x + jnp.float32(margin), 0.0)
    hinge = jnp.where(lane % 2 == 0, hinge, 0.0)

    diff = x - t
    sq = diff * diff

    if needs_mask:
        # Zero everything past the true 2*B extent: covers the <256-element
        # tail pad as well as DMA-clipped / clamped-duplicate trailing tiles.
        split = pl.program_id(0)
        logical_tile = split * tiles_per_split + step
        row = jax.lax.broadcasted_iota(jnp.int32, (tile_rows, lanes), 0)
        flat_idx = (logical_tile * tile_rows + row) * lanes + lane
        valid = flat_idx < total_elems
        hinge = jnp.where(valid, hinge, 0.0)
        sq = jnp.where(valid, sq, 0.0)

    # Weighted contribution folded to one (8, 128) vreg of partials per step
    # (pure VPU adds; the only cross-lane reduce happens once, in the wrapper).
    contrib = jnp.float32(w_pair) * hinge + jnp.float32(w_point) * sq        # (tile_rows, 256)
    half = lanes // 2
    folded = contrib[:, :half] + contrib[:, half:]                           # (tile_rows, 128)
    part = folded.reshape(tile_rows // 8, 8, half).sum(axis=0)               # (8, 128)
    o_ref[...] += part.reshape(1, 8, half)


# --------------------------------------------------------------------------
# Wrapper
# --------------------------------------------------------------------------
def pairwise_pointwise_hybrid_loss(preds, target, alpha=0.5, margin=0.1, *,
                                   tile_rows=_TILE_ROWS_MAX):
    """preds, target: (B, 2). Returns the scalar hybrid loss (float32)."""
    B = preds.shape[0]
    assert preds.shape == (B, 2) and target.shape == (B, 2)

    # Trace-time constants: loss = w_pair * sum(hinge) + w_point * sum(sq).
    w_pair = float(alpha) / float(B)
    w_point = (1.0 - float(alpha)) / (2.0 * float(B))
    margin = float(margin)

    if B <= _FAST_PATH_MAX_B:
        # Production-sized batches: one launch, no grid/scratch/relayout.
        kernel = functools.partial(_hybrid_loss_small_kernel,
                                   margin=margin, w_pair=w_pair, w_point=w_point)
        out = pl.pallas_call(
            kernel,
            out_shape=jax.ShapeDtypeStruct((1, 1), jnp.float32),
        )(preds, target)
        return out[0, 0]

    # ---- Dense (rows, 256) flat view; dtype kept (bf16 stays bf16 in HBM). ----
    lanes = _LANES
    total = 2 * B
    rows = pl.cdiv(total, lanes)

    flat_p = preds.reshape(-1)          # row-major: [p0+, p0-, p1+, p1-, ...]
    flat_t = target.reshape(-1)
    if rows * lanes != total:
        # Only when B % 128 != 0: a <256-element tail pad so the 2-D view
        # exists; the in-kernel mask zeroes these columns.
        pad = rows * lanes - total
        flat_p = jnp.pad(flat_p, (0, pad))
        flat_t = jnp.pad(flat_t, (0, pad))
    p2 = flat_p.reshape(rows, lanes)
    t2 = flat_t.reshape(rows, lanes)

    # (tile_r, 256) f32 = 1 MiB per input per buffer -> 4 MiB double-buffered,
    # safe under v7x's 32 MiB scoped VMEM (bump _TILE_ROWS_MAX on v5e/v6e).
    tile_r = max(8, min(int(tile_rows) // 8 * 8, rows // 8 * 8))
    n_tiles = pl.cdiv(rows, tile_r)

    # Shard the reduction across 2 TensorCores on v7x; on single-core chips the
    # "parallel" axis is just a cheap outer serial loop.
    num_splits = 2 if n_tiles >= 2 else 1
    tiles_per_split = pl.cdiv(n_tiles, num_splits)
    needs_mask = (num_splits * tiles_per_split * tile_r * lanes) != total

    next_shift = _roll_next_lane_shift(lanes)

    def in_map(split, step):
        # Clamp so over-provisioned trailing tiles never DMA out of bounds;
        # their contribution is zeroed by the in-kernel mask.
        logical = split * tiles_per_split + step
        return (jnp.minimum(logical, n_tiles - 1), 0)

    kernel = functools.partial(
        _hybrid_loss_tiled_kernel,
        margin=margin, w_pair=w_pair, w_point=w_point,
        tile_rows=tile_r, lanes=lanes, tiles_per_split=tiles_per_split,
        total_elems=total, needs_mask=needs_mask, next_shift=next_shift)

    out = pl.pallas_call(
        kernel,
        out_shape=jax.ShapeDtypeStruct((num_splits, 8, 128), jnp.float32),
        grid=(num_splits, tiles_per_split),
        in_specs=[
            pl.BlockSpec((tile_r, lanes), in_map),
            pl.BlockSpec((tile_r, lanes), in_map),
        ],
        out_specs=pl.BlockSpec((1, 8, 128), lambda split, step: (split, 0, 0)),
        compiler_params=pltpu.CompilerParams(
            dimension_semantics=("parallel", "arbitrary")),
    )(p2, t2)

    # Tiny epilogue reduce (num_splits * 1024 elements) outside the kernel.
    return jnp.sum(out)


def _reference(preds, target, alpha=0.5, margin=0.1):
    loss1 = jnp.mean(jnp.maximum(preds[:, 1] - preds[:, 0] + margin, 0.0))
    loss2 = jnp.mean((preds.reshape(-1) - target.reshape(-1)) ** 2)
    return alpha * loss1 + (1.0 - alpha) * loss2


if __name__ == "__main__":
    key = jax.random.PRNGKey(0)
    k1, k2, k3, k4 = jax.random.split(key, 4)

    # Small production-like batch: single-invocation fast path.
    B0 = 8
    p0 = jax.random.normal(k1, (B0, 2), dtype=jnp.float32)
    t0 = jax.random.uniform(k2, (B0, 2), dtype=jnp.float32)
    out0 = jax.block_until_ready(
        pairwise_pointwise_hybrid_loss(p0, t0, alpha=0.5, margin=0.1))
    ref0 = _reference(p0, t0, 0.5, 0.1)
    assert jnp.allclose(out0, ref0, atol=1e-5, rtol=1e-5), (out0, ref0)

    # 128-aligned larger batch: dense tiled path, no pad, no tail mask.
    B1 = 8192
    p1 = jax.random.normal(k3, (B1, 2), dtype=jnp.float32)
    t1 = jax.random.uniform(k4, (B1, 2), dtype=jnp.float32)
    out1 = jax.block_until_ready(
        pairwise_pointwise_hybrid_loss(p1, t1, alpha=0.3, margin=0.1))
    ref1 = _reference(p1, t1, 0.3, 0.1)
    assert jnp.allclose(out1, ref1, atol=1e-5, rtol=1e-5), (out1, ref1)

    # Ragged batch with a small tile override: exercises the 2-way core split,
    # index clamping and the flat-index tail mask.
    B2 = 33333
    p2 = jax.random.normal(k1, (B2, 2), dtype=jnp.float32)
    t2 = jax.random.uniform(k2, (B2, 2), dtype=jnp.float32)
    out2 = jax.block_until_ready(
        pairwise_pointwise_hybrid_loss(p2, t2, alpha=0.5, margin=0.1, tile_rows=64))
    ref2 = _reference(p2, t2, 0.5, 0.1)
    assert jnp.allclose(out2, ref2, atol=1e-5, rtol=1e-5), (out2, ref2)

    print("KERNEL_OK")
</pallas_src>

<mosaic_0001>
module attributes {stable_mosaic.version = 11 : i64} {
  func.func @_hybrid_loss_small_kernel(%arg0: memref<8x2xf32, #tpu.memory_space<vmem>>, %arg1: memref<8x2xf32, #tpu.memory_space<vmem>>, %arg2: memref<1x1xf32, #tpu.memory_space<vmem>>) attributes {dimension_semantics = [], scalar_prefetch = 0 : i64, scratch_operands = 0 : i64, tpu.core_type = #tpu.core_type<tc>} {
    %c0 = arith.constant 0 : index
    %c0_0 = arith.constant 0 : index
    %0 = vector.load %arg0[%c0, %c0_0] : memref<8x2xf32, #tpu.memory_space<vmem>>, vector<8x2xf32>
    %c0_1 = arith.constant 0 : index
    %c0_2 = arith.constant 0 : index
    %1 = vector.load %arg1[%c0_1, %c0_2] : memref<8x2xf32, #tpu.memory_space<vmem>>, vector<8x2xf32>
    %2 = vector.extract_strided_slice %0 {offsets = [0, 1], sizes = [8, 1], strides = [1, 1]} : vector<8x2xf32> to vector<8x1xf32>
    %3 = vector.extract_strided_slice %0 {offsets = [0, 0], sizes = [8, 1], strides = [1, 1]} : vector<8x2xf32> to vector<8x1xf32>
    %4 = arith.subf %2, %3 : vector<8x1xf32>
    %cst = arith.constant 1.000000e-01 : f32
    %5 = vector.broadcast %cst : f32 to vector<8x1xf32>
    %6 = arith.addf %4, %5 : vector<8x1xf32>
    %cst_3 = arith.constant 0.000000e+00 : f32
    %7 = vector.broadcast %cst_3 : f32 to vector<8x1xf32>
    %8 = arith.maximumf %6, %7 : vector<8x1xf32>
    %9 = arith.subf %0, %1 : vector<8x2xf32>
    %10 = arith.subf %0, %1 : vector<8x2xf32>
    %11 = arith.mulf %9, %10 : vector<8x2xf32>
    %cst_4 = arith.constant dense<0.000000e+00> : vector<1xf32>
    %12 = vector.multi_reduction <add>, %8, %cst_4 [0] : vector<8x1xf32> to vector<1xf32>
    %13 = vector.shape_cast %12 : vector<1xf32> to vector<1x1xf32>
    %cst_5 = arith.constant dense<0.000000e+00> : vector<2xf32>
    %14 = vector.multi_reduction <add>, %11, %cst_5 [0] : vector<8x2xf32> to vector<2xf32>
    %15 = vector.shape_cast %14 : vector<2xf32> to vector<1x2xf32>
    %cst_6 = arith.constant 6.250000e-02 : f32
    %16 = vector.broadcast %cst_6 : f32 to vector<1x1xf32>
    %17 = arith.mulf %16, %13 : vector<1x1xf32>
    %18 = vector.extract_strided_slice %15 {offsets = [0, 0], sizes = [1, 1], strides = [1, 1]} : vector<1x2xf32> to vector<1x1xf32>
    %19 = vector.extract_strided_slice %15 {offsets = [0, 1], sizes = [1, 1], strides = [1, 1]} : vector<1x2xf32> to vector<1x1xf32>
    %20 = arith.addf %18, %19 : vector<1x1xf32>
    %cst_7 = arith.constant 3.125000e-02 : f32
    %21 = vector.broadcast %cst_7 : f32 to vector<1x1xf32>
    %22 = arith.mulf %21, %20 : vector<1x1xf32>
    %23 = arith.addf %17, %22 : vector<1x1xf32>
    %c0_8 = arith.constant 0 : index
    %c0_9 = arith.constant 0 : index
    %24 = vector.load %arg2[%c0_8, %c0_9] : memref<1x1xf32, #tpu.memory_space<vmem>>, vector<1x1xf32>
    tpu.vector_store %arg2[%c0_8, %c0_9], %23 {strides = array<i32>} : memref<1x1xf32, #tpu.memory_space<vmem>>, vector<1x1xf32>,
    return
  }
}

</mosaic_0001>

<bundles_post_ra>
// kernel: tpu_custom_call.1
= control target key start
LH: loop header
LB: loop body
LE: loop exit
PB: predicated region body
PF: predicated region fallthrough
CT: control target
= control target key end

     0   :  { %s134_s0 = inlined_call_operand.vmem [shape: f32[8,2], index: 0, kind: input, shape index: {}]   ;;  %s135_s1 = inlined_call_operand.vmem [shape: f32[8,2], index: 1, kind: input, shape index: {}]   ;;  %s136_s2 = inlined_call_operand.hbm [shape: f32[1,1], index: 2, kind: output, shape index: {}]  }
   0x1   :  { %v12_v0 = vld [vmem:[%s134_s0] sm:$0xff] }
   0x2   :  { %v13_v1 = vld [vmem:[%s135_s1] sm:$0xff] }
   0x3   :  { %v21_v2 = vsub.f32 %v12_v0, %v13_v1 }
   0x4   :  { %7 = vsyncpa [#allocation3], 0  ;;  %vm31_vm0 = vcmask 15360   ;;  %s98_s13 = smov 127   ;;  %s99_s14 = smov 1   ;;  %vm23_vm1 = vcmask 15368  }
   0x5   :  { %v22_v3 = vmul.f32 %v21_v2, %v21_v2  ;;  %s100_s0 = smov [#allocation2]   ;;  %vm55_vm2 = vcmask 0  }
   0x6   :  { %s63_s1 = sshll.u32 %s100_s0, 4  ;;  %s64_s1 = int_to_ptr.vmem [resolvable:$true] %s63_s1 }
   0x7   :  { %v32_v4 = vsel %vm31_vm0, %v22_v3, 0.0  ;;  %s74_s15 = scalar_lea.vmem %s64_s1, 16  ;;  %s78_s16 = scalar_lea.vmem %s64_s1, 32 }
   0x8   :  { %v33_v5 = vrot.slane %v32_v4, 4  ;;  %p75_p0 = scmp.ne.s32.totalorder %s64_s1, %s74_s15  ;;  %p79_p1 = scmp.lt.s32.totalorder %s64_s1, %s64_s1 }
   0x9   :  { %p80_p2 = scmp.lt.s32.totalorder %s78_s16, %s74_s15 }
   0xa   :  { %v34_v6 = vadd.f32 %v33_v5, %v32_v4 }
   0xb   :  { %p81_p3 = por %p80_p2, %p79_p1 }
   0xc   :  { %v35_v7 = vrot.slane %v34_v6, 2 }
   0xd   :  { %p82_p4 = pnand %p81_p3, %p75_p0 }
   0xe   :  { %v36_v8 = vadd.f32 %v35_v7, %v34_v6 }
  0x10   :  { %v37_v9 = vrot.slane %v36_v8, 1 }
  0x12   :  { %v38_v10 = vadd.f32 %v37_v9, %v36_v8 }
  0x14   :  { %41 = vrot.lane.b32.xlu0 %v38_v10, %s98_s13 }
  0x18   :  { %15 = vrot.lane.b32.xlu0 %v12_v0, %s99_s14 }
  0x86   :  { %v42_v11 = vpop.permute.xlu0 %41 }
  0x87   :  { %v44_v12 = vadd.f32 %v42_v11, %v38_v10 }
  0x89   :  { %v45_v13 = vmul.f32 0.03125, %v44_v12 }
  0x8a   :  { %v16_v14 = vpop.permute.xlu0 %15 }
  0x8b   :  { %47 = vrot.lane.b32.xlu1 %v45_v13, %s99_s14  ;;  %v18_v15 = vsub.f32 %v12_v0, %v16_v14 }
  0x8d   :  { %v19_v16 = vadd.f32 0.1, %v18_v15 }
  0x8f   :  { %v20_v17 = vmax.f32 %v19_v16, 0.0 }
  0x91   :  { %v24_v18 = vsel %vm23_vm1, %v20_v17, 0.0 }
  0x92   :  { %v25_v19 = vrot.slane %v24_v18, 4 }
  0x94   :  { %v26_v20 = vadd.f32 %v25_v19, %v24_v18 }
  0x96   :  { %v27_v21 = vrot.slane %v26_v20, 2 }
  0x98   :  { %v28_v22 = vadd.f32 %v27_v21, %v26_v20 }
  0x9a   :  { %v29_v23 = vrot.slane %v28_v22, 1 }
  0x9c   :  { %v30_v24 = vadd.f32 %v29_v23, %v28_v22 }
  0x9e   :  { %v39_v25 = vmul.f32 0.0625, %v30_v24 }
  0xfd   :  { %v48_v26 = vpop.permute.xlu1 %47 }
  0xfe   :  { %v50_v27 = vadd.f32 %v48_v26, %v39_v25 }
 0x100   :  { %52 = vrot.lane.b32.xlu1 %v50_v27, %s98_s13 }
 0x172   :  { %v53_v28 = vpop.permute.xlu1 %52 }
 0x173   :  { %56 = vst.msk [vmem:[#allocation2] sm:$0x1] %vm55_vm2, %v53_v28 }
 0x174   :  { %85 = shalt.err (!%p82_p4)
}
 0x175   :  { %s86_s19 = scalar_lea.hbm %s136_s2, 16 }
 0x176   :  { %p87_p5 = scmp.ne.s32.totalorder %s136_s2, %s86_s19  ;;  %p90_p6 = scmp.lt.u32.totalorder %s86_s19, %s136_s2 }
 0x178   :  { %p92_p7 = pnand %p90_p6, %p87_p5 }
 0x17a   :  { %95 = shalt.err (!%p92_p7)
}
 0x17b   :  { %66 = dma.vmem_to_hbm [thread:$0]  %s64_s1, 16, %s136_s2, [#allocation3]  }
 0x17c   :  { %96 = dma.done.wait [#allocation3], 16  }
 0x17d   :  { %97 = vsyncadd [#allocation3], 4294967280 }
 0x17e   :  { %70 = vsyncpa [#allocation3], 1 }

</bundles_post_ra>
